<compile_context>
chip_gen: v7x
topology: tpu7x:2x2x1
jax: 0.10.0
libtpu: 0.0.40
codegen_flags: <defaults>
</compile_context>

<pallas_src>
import jax
import jax.numpy as jnp
from jax.experimental import pallas as pl
from jax.experimental.pallas import tpu as pltpu

_LANE = 128          # TPU lane width: pad the class axis to a multiple of this
_NEG_INF = -1e30     # bias for padded classes -> exp() underflows to 0


def _linear_softmax_kernel(x_ref, w_ref, b_ref, o_ref):
    """Fused: logits = x @ W + b ; y_pred = softmax(logits, axis=1).

    W / b are padded along the class axis; padded columns have zero weights
    and a -1e30 bias, so they contribute exactly 0 probability mass.
    """
    x = x_ref[...]                                # (TB, D_in)      f32
    w = w_ref[...]                                # (D_in, D_pad)   f32
    b = b_ref[...]                                # (1, D_pad)      f32

    logits = jnp.dot(x, w, preferred_element_type=jnp.float32) + b

    # numerically stable softmax over the (padded) class axis
    m = jnp.max(logits, axis=-1, keepdims=True)
    e = jnp.exp(logits - m)
    denom = jnp.sum(e, axis=-1, keepdims=True)
    o_ref[...] = (e / denom).astype(o_ref.dtype)  # exact divide (correctness)


def classification_forward(x, w_t, b, *, tile_b=None):
    """softmax(x @ w_t + b, axis=1) via a single fused Pallas TPU kernel.

    x:   (B, D_in)     float32
    w_t: (D_in, D_out) float32   (transposed PyTorch nn.Linear weight)
    b:   (D_out,)      float32
    """
    B, D_in = x.shape
    D_out = w_t.shape[1]

    # Pad the class axis to the lane width for dense (unmasked) vector stores.
    D_pad = ((D_out + _LANE - 1) // _LANE) * _LANE
    w_p = jnp.zeros((D_in, D_pad), jnp.float32).at[:, :D_out].set(w_t)
    b_p = jnp.full((1, D_pad), _NEG_INF, jnp.float32).at[0, :D_out].set(b)

    # Collapse the grid at small sizes (one block = whole problem); cap the
    # batch tile at 128 rows so the MXU M-dimension stays full at large B.
    if tile_b is None:
        tile_b = B if B <= 128 else 128
    assert B % tile_b == 0, "batch must be divisible by the batch tile"
    grid = (B // tile_b,)

    out_padded = pl.pallas_call(
        _linear_softmax_kernel,
        out_shape=jax.ShapeDtypeStruct((B, D_pad), jnp.float32),
        grid_spec=pltpu.PrefetchScalarGridSpec(
            num_scalar_prefetch=0,
            grid=grid,
            in_specs=[
                pl.BlockSpec((tile_b, D_in), lambda i: (i, 0)),
                # Weight & bias: full-array blocks, constant index_map -> stay
                # resident in VMEM across grid steps (no per-step re-DMA).
                pl.BlockSpec((D_in, D_pad), lambda i: (0, 0)),
                pl.BlockSpec((1, D_pad), lambda i: (0, 0)),
            ],
            out_specs=pl.BlockSpec((tile_b, D_pad), lambda i: (i, 0)),
        ),
        compiler_params=pltpu.CompilerParams(
            dimension_semantics=("parallel",),
        ),
    )(x, w_p, b_p)

    # Drop the padded classes (zero probability by construction).
    return out_padded[:, :D_out]


def classification_loss(y_pred, y):
    """PyTorch semantics: nn.functional.cross_entropy(y_pred, y) where y_pred
    are already softmax probabilities, so CE applies a *second* log_softmax —
    exactly what the original module does.  Tiny O(B*C) glue kept in JAX."""
    logp = jax.nn.log_softmax(y_pred, axis=1)
    nll = -jnp.take_along_axis(logp, y[:, None], axis=1)[:, 0]
    return jnp.mean(nll)


if __name__ == "__main__":
    batch, input_size, output_size = 16, 32, 16

    key = jax.random.PRNGKey(0)
    kx, kw, kb, ky = jax.random.split(key, 4)

    # Deterministic parameter init mimicking nn.Linear: U(-1/sqrt(in), 1/sqrt(in))
    bound = 1.0 / jnp.sqrt(jnp.float32(input_size))
    w = jax.random.uniform(kw, (output_size, input_size), jnp.float32, -bound, bound)
    b = jax.random.uniform(kb, (output_size,), jnp.float32, -bound, bound)
    w_t = w.T  # (input_size, output_size)

    x = jax.random.normal(kx, (batch, input_size), jnp.float32)
    y = jax.random.randint(ky, (batch,), 0, output_size)

    # Forward (y=None path): softmax probabilities from the Pallas kernel.
    y_pred = classification_forward(x, w_t, b)
    y_pred = jax.block_until_ready(y_pred)

    # Forward (y given path): cross-entropy loss on the kernel output.
    loss = jax.block_until_ready(classification_loss(y_pred, y))

    # Sanity check against a pure-JAX reference.
    ref = jax.nn.softmax(x @ w_t + b, axis=1)
    assert jnp.allclose(y_pred, ref, atol=1e-5, rtol=1e-5)
    assert bool(jnp.isfinite(loss))

    print("KERNEL_OK")
</pallas_src>

<mosaic_0001>
module attributes {stable_mosaic.version = 11 : i64} {
  func.func @_linear_softmax_kernel(%arg0: i32, %arg1: memref<16x32xf32, #tpu.memory_space<vmem>>, %arg2: memref<32x128xf32, #tpu.memory_space<vmem>>, %arg3: memref<1x128xf32, #tpu.memory_space<vmem>>, %arg4: memref<16x128xf32, #tpu.memory_space<vmem>>) attributes {dimension_semantics = [#tpu.dimension_semantics<parallel>], iteration_bounds = array<i64: 1>, scalar_prefetch = 0 : i64, scratch_operands = 0 : i64, tpu.core_type = #tpu.core_type<tc>, window_params = [{transform_indices = @transform_0, window_bounds = array<i64: 16, 32>}, {pipeline_mode = #tpu.pipeline_mode<synchronous>, transform_indices = @transform_1, window_bounds = array<i64: 32, 128>}, {pipeline_mode = #tpu.pipeline_mode<synchronous>, transform_indices = @transform_2, window_bounds = array<i64: 1, 128>}, {transform_indices = @transform_3, window_bounds = array<i64: 16, 128>}]} {
    %c0 = arith.constant 0 : index
    %c0_0 = arith.constant 0 : index
    %0 = vector.load %arg1[%c0, %c0_0] : memref<16x32xf32, #tpu.memory_space<vmem>>, vector<16x32xf32>
    %c0_1 = arith.constant 0 : index
    %c0_2 = arith.constant 0 : index
    %1 = vector.load %arg2[%c0_1, %c0_2] : memref<32x128xf32, #tpu.memory_space<vmem>>, vector<32x128xf32>
    %c0_3 = arith.constant 0 : index
    %c0_4 = arith.constant 0 : index
    %2 = vector.load %arg3[%c0_3, %c0_4] : memref<1x128xf32, #tpu.memory_space<vmem>>, vector<1x128xf32>
    %cst = arith.constant dense<0.000000e+00> : vector<16x128xf32>
    %3 = tpu.matmul %0, %1, %cst {dimension_numbers = #tpu.dot_dimension_numbers<[1], [0], [0], [1], [0, 0, 1, 1], [], []>} : vector<16x32xf32>, vector<32x128xf32>, vector<16x128xf32> -> vector<16x128xf32>
    %4 = vector.broadcast %2 : vector<1x128xf32> to vector<16x128xf32>
    %5 = arith.addf %3, %4 : vector<16x128xf32>
    %cst_5 = arith.constant dense<0xFF800000> : vector<16xf32>
    %6 = vector.multi_reduction <maximumf>, %5, %cst_5 [1] : vector<16x128xf32> to vector<16xf32>
    %7 = vector.shape_cast %6 : vector<16xf32> to vector<16x1xf32>
    %8 = vector.broadcast %7 : vector<16x1xf32> to vector<16x128xf32>
    %9 = arith.subf %5, %8 : vector<16x128xf32>
    %10 = math.exp %9 : vector<16x128xf32>
    %cst_6 = arith.constant dense<0.000000e+00> : vector<16xf32>
    %11 = vector.multi_reduction <add>, %10, %cst_6 [1] : vector<16x128xf32> to vector<16xf32>
    %12 = vector.shape_cast %11 : vector<16xf32> to vector<16x1xf32>
    %13 = vector.broadcast %12 : vector<16x1xf32> to vector<16x128xf32>
    %14 = arith.divf %10, %13 : vector<16x128xf32>
    %c0_7 = arith.constant 0 : index
    %c0_8 = arith.constant 0 : index
    %15 = vector.load %arg4[%c0_7, %c0_8] : memref<16x128xf32, #tpu.memory_space<vmem>>, vector<16x128xf32>
    tpu.vector_store %arg4[%c0_7, %c0_8], %14 {strides = array<i32>} : memref<16x128xf32, #tpu.memory_space<vmem>>, vector<16x128xf32>,
    return
  }
  func.func @transform_0(%arg0: i32) -> (i32, i32) {
    %c0_i32 = arith.constant 0 : i32
    %c0_i32_0 = arith.constant 0 : i32
    return %arg0, %c0_i32 : i32, i32
  }
  func.func @transform_1(%arg0: i32) -> (i32, i32) {
    %c0_i32 = arith.constant 0 : i32
    %c0_i32_0 = arith.constant 0 : i32
    %c0_i32_1 = arith.constant 0 : i32
    return %c0_i32, %c0_i32_0 : i32, i32
  }
  func.func @transform_2(%arg0: i32) -> (i32, i32) {
    %c0_i32 = arith.constant 0 : i32
    %c0_i32_0 = arith.constant 0 : i32
    %c0_i32_1 = arith.constant 0 : i32
    return %c0_i32, %c0_i32_0 : i32, i32
  }
  func.func @transform_3(%arg0: i32) -> (i32, i32) {
    %c0_i32 = arith.constant 0 : i32
    %c0_i32_0 = arith.constant 0 : i32
    return %arg0, %c0_i32 : i32, i32
  }
}

</mosaic_0001>

<bundles_post_ra>
// kernel: tpu_custom_call.1
= control target key start
LH: loop header
LB: loop body
LE: loop exit
PB: predicated region body
PF: predicated region fallthrough
CT: control target
= control target key end

     0   :  { %8 = vsyncpa [#allocation3], 0  ;;  %s362_s0 = inlined_call_operand.hbm [shape: f32[16,32], index: 0, kind: input, shape index: {}]   ;;  %s363_s1 = inlined_call_operand.hbm [shape: f32[32,128], index: 1, kind: input, shape index: {}]   ;;  %s364_s2 = inlined_call_operand.vmem [shape: f32[1,128], index: 2, kind: input, shape index: {}]   ;;  %s365_s3 = inlined_call_operand.hbm [shape: f32[16,128], index: 3, kind: output, shape index: {}]  }
   0x1   :  { %9 = vsyncpa [#allocation6], 0 }
   0x2   :  { %10 = vsyncpa [#allocation4], 0  ;;  %s289_s12 = smov [#allocation2]   ;;  %s217_s16 = scalar_lea.hbm %s362_s0, 256 }
   0x3   :  { %s16_s13 = sshll.u32 %s289_s12, 4  ;;  %p218_p0 = scmp.ne.s32.totalorder %s362_s0, %s217_s16  ;;  %s17_s13 = int_to_ptr.vmem [resolvable:$true] %s16_s13 }
   0x4   :  { %p221_p1 = scmp.lt.u32.totalorder %s217_s16, %s362_s0 }
   0x6   :  { %p223_p2 = pnand %p221_p1, %p218_p0 }
   0x8   :  { %226 = shalt.err (!%p223_p2)
}
   0x9   :  { %s227_s21 = scalar_lea.vmem %s17_s13, 256  ;;  %p232_p4 = scmp.lt.s32.totalorder %s17_s13, %s17_s13 }
   0xa   :  { %p228_p3 = scmp.ne.s32.totalorder %s17_s13, %s227_s21  ;;  %p233_p5 = scmp.lt.s32.totalorder %s227_s21, %s227_s21 }
   0xc   :  { %p234_p6 = por %p233_p5, %p232_p4 }
   0xe   :  { %p235_p7 = pnand %p234_p6, %p228_p3 }
  0x10   :  { %238 = shalt.err (!%p235_p7)
}
  0x11   :  { %s290_s22 = smov 128   ;;  %s291_s23 = smov 8  }
  0x12   :  { %22 = dma.hbm_to_vmem [thread:$0]  %s362_s0, 256, %s17_s13, [#allocation3], %s290_s22, %s290_s22, %s291_s23  }
  0x13   :  { %s292_s26 = smov [#allocation5]   ;;  %s239_s30 = scalar_lea.hbm %s363_s1, 512 }
  0x14   :  { %s28_s27 = sshll.u32 %s292_s26, 4  ;;  %p240_p8 = scmp.ne.s32.totalorder %s363_s1, %s239_s30  ;;  %s29_s27 = int_to_ptr.vmem [resolvable:$true] %s28_s27 }
  0x15   :  { %p243_p9 = scmp.lt.u32.totalorder %s239_s30, %s363_s1 }
  0x17   :  { %p245_p10 = pnand %p243_p9, %p240_p8 }
  0x19   :  { %248 = shalt.err (!%p245_p10)
}
  0x1a   :  { %s249_s8 = scalar_lea.vmem %s29_s27, 512  ;;  %p254_p12 = scmp.lt.s32.totalorder %s29_s27, %s29_s27 }
  0x1b   :  { %p250_p11 = scmp.ne.s32.totalorder %s29_s27, %s249_s8  ;;  %p255_p13 = scmp.lt.s32.totalorder %s249_s8, %s249_s8 }
  0x1d   :  { %p256_p0 = por %p255_p13, %p254_p12 }
  0x1f   :  { %p257_p1 = pnand %p256_p0, %p250_p11 }
  0x21   :  { %260 = shalt.err (!%p257_p1)
}
  0x22   :  { %34 = dma.hbm_to_vmem [thread:$0]  %s363_s1, 512, %s29_s27, [#allocation6], %s290_s22, %s290_s22, %s291_s23  }
  0x23   :  { %283 = dma.done.wait [#allocation3], 256  }
  0x24   :  { %284 = vsyncadd [#allocation3], 4294967040 }
  0x25   :  { %285 = dma.done.wait [#allocation6], 512  }
  0x26   :  { %286 = vsyncadd [#allocation6], 4294966784  ;;  %vm56_vm0 = vcmask 261120   ;;  %v45_v0 = vld [vmem:[#allocation5] sm:$0xff]  ;;  %v46_v1 = vld [vmem:[#allocation5 + $0x8] sm:$0xff] }
  0x27   :  { %v47_v2 = vld [vmem:[#allocation5 + $0x10] sm:$0xff]  ;;  %v196_v3 = vpack.c.bf16 %v46_v1, %v45_v0  ;;  %v48_v4 = vld [vmem:[#allocation5 + $0x18] sm:$0xff] }
  0x28   :  { %v43_v5 = vld [vmem:[#allocation2] sm:$0xff]  ;;  %v200_v6 = vpack.c.bf16 %v48_v4, %v47_v2  ;;  %v44_v7 = vld [vmem:[#allocation2 + $0x8] sm:$0xff] }
  0x29   :  { %193 = vmatprep.mubr.msk.f32.mxu0 %vm56_vm0, %v43_v5  ;;  %197 = vmatprep.subr.bf16.mxu0 %v196_v3  ;;  %v176_v8 = vld [vmem:[%s364_s2] ss:$0 sm:$0xff]  ;;  %s293_s2 = smov [#allocation7]  }
  0x2a   :  { %199 = vmatpush3.bf16.msra.mxu0 %v196_v3  ;;  %s163_s11 = sshll.u32 %s293_s2, 4  ;;  %s164_s11 = int_to_ptr.vmem [resolvable:$true] %s163_s11 }
  0x2b   :  { %201 = vmatprep.subr.bf16.mxu0 %v200_v6  ;;  %s261_s12 = scalar_lea.vmem %s164_s11, 256  ;;  %p266_p3 = scmp.lt.s32.totalorder %s164_s11, %s164_s11 }
  0x2c   :  { %p262_p2 = scmp.ne.s32.totalorder %s164_s11, %s261_s12  ;;  %p267_p4 = scmp.lt.s32.totalorder %s261_s12, %s261_s12 }
  0x2e   :  { %203 = vmatpush3.bf16.msra.mxu0 %v200_v6  ;;  %p268_p5 = por %p267_p4, %p266_p3 }
  0x30   :  { %p269_p6 = pnand %p268_p5, %p262_p2 }
  0x31   :  { %194 = vmatmul.mubr.msk.f32.vlgmr.msra.gmra.mrb[0].mxu0 %vm56_vm0, %v44_v7 }
 0x104   :  { %v195_v9 = vpop.f32.mrb[0].mxu0 }
 0x105   :  { %v129_v10 = vpop.f32.mrb[1].mxu0  ;;  %v135_v12 = vadd.f32 %v195_v9, %v176_v8 }
 0x106   :  { %v130_v11 = vadd.f32 %v176_v8, %v129_v10 }
 0x108   :  { %138 = vmax.xlane.f32.xlu0 %v130_v11 }
 0x10c   :  { %140 = vmax.xlane.f32.xlu0 %v135_v12 }
 0x195   :  { %v139_v13 = vpop.xlane.xlu0 %138 }
 0x196   :  { %v142_v14 = vsub.f32 %v130_v11, %v139_v13 }
 0x198   :  { %v144_v15 = vmul.f32 1.442695, %v142_v14 }
 0x199   :  { %v141_v16 = vpop.xlane.xlu0 %140 }
 0x19a   :  { %209 = vpow2.f32 %v144_v15  ;;  %v143_v17 = vsub.f32 %v135_v12, %v141_v16 }
 0x19c   :  { %v146_v18 = vmul.f32 1.442695, %v143_v17 }
 0x19e   :  { %211 = vpow2.f32 %v146_v18 }
 0x1a4   :  { %v210_v19 = vpop.eup %209 }
 0x1a5   :  { %148 = vadd.xlane.f32.xlu1 %v210_v19 }
 0x1a8   :  { %v212_v20 = vpop.eup %211 }
 0x1a9   :  { %150 = vadd.xlane.f32.xlu1 %v212_v20 }
 0x232   :  { %v149_v21 = vpop.xlane.xlu1 %148 }
 0x233   :  { %213 = vrcp.f32 %v149_v21 }
 0x236   :  { %v151_v22 = vpop.xlane.xlu1 %150 }
 0x237   :  { %215 = vrcp.f32 %v151_v22 }
 0x23d   :  { %v214_v23 = vpop.eup %213 }
 0x23e   :  { %v153_v24 = vmul.f32 %v214_v23, %v210_v19 }
 0x240   :  { %156 = vst [vmem:[#allocation7] sm:$0xff] %v153_v24 }
 0x241   :  { %v216_v25 = vpop.eup %215 }
 0x242   :  { %v155_v26 = vmul.f32 %v216_v25, %v212_v20 }
 0x244   :  { %157 = vst [vmem:[#allocation7 + $0x8] sm:$0xff] %v155_v26 }
 0x245   :  { %272 = shalt.err (!%p269_p6)
}
 0x246   :  { %s273_s15 = scalar_lea.hbm %s365_s3, 256 }
 0x247   :  { %p274_p7 = scmp.ne.s32.totalorder %s365_s3, %s273_s15  ;;  %p277_p8 = scmp.lt.u32.totalorder %s273_s15, %s365_s3 }
 0x249   :  { %p279_p9 = pnand %p277_p8, %p274_p7 }
 0x24b   :  { %282 = shalt.err (!%p279_p9)
}
 0x24c   :  { %169 = dma.vmem_to_hbm [thread:$0]  %s164_s11, 256, %s365_s3, [#allocation4], %s290_s22, %s290_s22, %s291_s23  }
 0x24d   :  { %287 = dma.done.wait [#allocation4], 256  }
 0x24e   :  { %288 = vsyncadd [#allocation4], 4294967040 }
 0x24f   :  { %173 = vsyncpa [#allocation3], 1 }
 0x250   :  { %174 = vsyncpa [#allocation6], 1 }
 0x251   :  { %175 = vsyncpa [#allocation4], 1 }

</bundles_post_ra>
